<compile_context>
chip_gen: v6e
topology: v6e:2x2x1
jax: 0.10.0
libtpu: 0.0.40
codegen_flags: <defaults>
</compile_context>

<pallas_src>
import functools
import math

import jax
import jax.numpy as jnp
from jax.experimental import pallas as pl
from jax.experimental.pallas import tpu as pltpu

# Per-array per-block VMEM budget.  Double-buffered in + out stays well under
# the tightest scoped-VMEM default (v5e: 16 MiB).
_MAX_BLOCK_BYTES = 2 * 1024 * 1024
# Target block size before we stop enlarging the batch block (channels_first).
_MIN_BLOCK_BYTES = 1 * 1024 * 1024


def _round_up(x, m):
    return ((x + m - 1) // m) * m


def _pick_lane_tile(r, c, itemsize, prefer_split=False):
    """Pixel-axis (lane) tile: full extent if small, else the largest
    128-multiple under the VMEM budget.  No divisibility requirement — the
    grid uses pl.cdiv and tail lanes are masked on store."""
    max_t = max(128, (_MAX_BLOCK_BYTES // (max(c, 8) * itemsize)) // 128 * 128)
    if prefer_split and r > 256:
        # Single-image case: make sure there are >= 2 grid steps (v7x).
        max_t = min(max_t, _round_up(pl.cdiv(r, 2), 128))
    return r if r <= max_t else max_t


def _pick_row_tile(n_rows, row_bytes):
    """Sublane (row) tile for 2-D layouts: a multiple of 8 (or the full
    extent), capped by the VMEM budget, and sized so the grid has >= 2 steps
    whenever there is enough work (keeps both v7x TensorCores busy)."""
    if n_rows <= 8:
        return n_rows
    max_rows = max(8, (_MAX_BLOCK_BYTES // max(row_bytes, 1)) // 8 * 8)
    half = _round_up(pl.cdiv(n_rows, 2), 8)
    return min(max_rows, half)


def _pick_batch_tile(b, n_lane_tiles, bytes_per_image):
    """Batch-block channels_first so tiny feature maps still make ~1 MiB DMAs,
    without collapsing the grid below 2 steps or blowing the VMEM budget."""
    bb = 1
    while (bb * 2 <= b
           and bytes_per_image * bb < _MIN_BLOCK_BYTES
           and bytes_per_image * bb * 2 <= _MAX_BLOCK_BYTES
           and pl.cdiv(b, bb * 2) * n_lane_tiles >= 2):
        bb *= 2
    return bb


# ---------------------------------------------------------------------------
# Kernels (all statistics in f32; cast only on store)
# ---------------------------------------------------------------------------
def _ln_channels_first_kernel(x_ref, w_ref, b_ref, o_ref, *, eps):
    """x_ref: (BB, C, T) — channels on sublanes, pixels on lanes."""
    x = x_ref[...].astype(jnp.float32)
    mu = jnp.mean(x, axis=-2, keepdims=True)            # sublane reduce
    xc = x - mu
    var = jnp.mean(xc * xc, axis=-2, keepdims=True)      # biased var (torch)
    inv = jax.lax.rsqrt(var + eps)                       # EUP rsqrt
    o_ref[...] = ((xc * inv) * w_ref[...] + b_ref[...]).astype(o_ref.dtype)


def _group_sum(x, m_bf16):
    """Per-lane-group sums broadcast back to every lane of the group, on the
    otherwise-idle MXU.  hi/lo bf16 split keeps ~f32 accuracy (the block-
    diagonal all-ones matrix is exact in bf16)."""
    hi = x.astype(jnp.bfloat16)
    lo = (x - hi.astype(jnp.float32)).astype(jnp.bfloat16)
    s = jnp.dot(hi, m_bf16, preferred_element_type=jnp.float32)
    s = s + jnp.dot(lo, m_bf16, preferred_element_type=jnp.float32)
    return s


def _ln_channels_last_packed_kernel(x_ref, w_ref, b_ref, m_ref, o_ref, *,
                                    eps, inv_c):
    """x_ref: (TR, 128) — each 128-lane row holds 128//C consecutive pixels
    (free row-major reshape; no HBM transpose anywhere)."""
    x = x_ref[...].astype(jnp.float32)
    m = m_ref[...]                                        # (128,128) bf16 block-diag ones
    mu = _group_sum(x, m) * inv_c
    xc = x - mu
    var = _group_sum(xc * xc, m) * inv_c
    inv = jax.lax.rsqrt(var + eps)
    o_ref[...] = ((xc * inv) * w_ref[...] + b_ref[...]).astype(o_ref.dtype)


def _ln_channels_last_lane_kernel(x_ref, w_ref, b_ref, o_ref, *, eps):
    """x_ref: (TR, C) natural layout (C does not divide 128, e.g. real
    ConvNeXt channels): lane reduction on the XLU, no transposes."""
    x = x_ref[...].astype(jnp.float32)
    mu = jnp.mean(x, axis=-1, keepdims=True)
    xc = x - mu
    var = jnp.mean(xc * xc, axis=-1, keepdims=True)
    inv = jax.lax.rsqrt(var + eps)
    o_ref[...] = ((xc * inv) * w_ref[...] + b_ref[...]).astype(o_ref.dtype)


# ---------------------------------------------------------------------------
# channels_first:  x is NCHW, normalize over dim 1 (C).
# ---------------------------------------------------------------------------
def layernorm_channels_first(x, weight, bias, eps=1e-6):
    B, C, H, W = x.shape
    R = H * W
    itemsize = x.dtype.itemsize
    T = _pick_lane_tile(R, C, itemsize, prefer_split=(B == 1))
    n_t = pl.cdiv(R, T)
    BB = _pick_batch_tile(B, n_t, C * T * itemsize)
    n_b = pl.cdiv(B, BB)

    x3 = x.reshape(B, C, R)                         # free reshape, no transpose
    w = weight.astype(jnp.float32).reshape(C, 1)
    b = bias.astype(jnp.float32).reshape(C, 1)

    out = pl.pallas_call(
        functools.partial(_ln_channels_first_kernel, eps=eps),
        out_shape=jax.ShapeDtypeStruct((B, C, R), x.dtype),
        grid=(n_b, n_t),
        in_specs=[
            pl.BlockSpec((BB, C, T), lambda i, t: (i, 0, t)),
            pl.BlockSpec((C, 1), lambda i, t: (0, 0)),
            pl.BlockSpec((C, 1), lambda i, t: (0, 0)),
        ],
        out_specs=pl.BlockSpec((BB, C, T), lambda i, t: (i, 0, t)),
        compiler_params=pltpu.CompilerParams(
            dimension_semantics=("parallel", "parallel")),
    )(x3, w, b)
    return out.reshape(B, C, H, W)


# ---------------------------------------------------------------------------
# channels_last:  x is (..., C), normalize over the last dim.
# ---------------------------------------------------------------------------
def layernorm_channels_last(x, weight, bias, eps=1e-6):
    C = x.shape[-1]
    R = math.prod(x.shape[:-1])
    itemsize = x.dtype.itemsize
    w = weight.astype(jnp.float32)
    b = bias.astype(jnp.float32)

    if C <= 128 and 128 % C == 0 and (R * C) % 128 == 0:
        # -------- packed path: lane-dense, no HBM transpose, MXU reduce -----
        G = 128 // C                                   # pixels per 128-lane row
        n_rows = (R * C) // 128
        TR = _pick_row_tile(n_rows, 128 * max(itemsize, 4))
        n_blk = pl.cdiv(n_rows, TR)

        x2 = x.reshape(n_rows, 128)                    # free row-major reshape
        w_row = jnp.tile(w, G).reshape(1, 128)
        b_row = jnp.tile(b, G).reshape(1, 128)
        lane = jnp.arange(128, dtype=jnp.int32)
        m = (lane[:, None] // C == lane[None, :] // C).astype(jnp.bfloat16)

        out = pl.pallas_call(
            functools.partial(_ln_channels_last_packed_kernel,
                              eps=eps, inv_c=1.0 / C),
            out_shape=jax.ShapeDtypeStruct((n_rows, 128), x.dtype),
            grid=(n_blk,),
            in_specs=[
                pl.BlockSpec((TR, 128), lambda i: (i, 0)),
                pl.BlockSpec((1, 128), lambda i: (0, 0)),
                pl.BlockSpec((1, 128), lambda i: (0, 0)),
                pl.BlockSpec((128, 128), lambda i: (0, 0)),
            ],
            out_specs=pl.BlockSpec((TR, 128), lambda i: (i, 0)),
            compiler_params=pltpu.CompilerParams(
                dimension_semantics=("parallel",)),
        )(x2, w_row, b_row, m)
        return out.reshape(x.shape)

    # -------- general path: natural (R, C) layout, lane reduction -----------
    TR = _pick_row_tile(R, max(C, 128) * max(itemsize, 4))
    n_blk = pl.cdiv(R, TR)
    x2 = x.reshape(R, C)
    out = pl.pallas_call(
        functools.partial(_ln_channels_last_lane_kernel, eps=eps),
        out_shape=jax.ShapeDtypeStruct((R, C), x.dtype),
        grid=(n_blk,),
        in_specs=[
            pl.BlockSpec((TR, C), lambda i: (i, 0)),
            pl.BlockSpec((1, C), lambda i: (0, 0)),
            pl.BlockSpec((1, C), lambda i: (0, 0)),
        ],
        out_specs=pl.BlockSpec((TR, C), lambda i: (i, 0)),
        compiler_params=pltpu.CompilerParams(
            dimension_semantics=("parallel",)),
    )(x2, w.reshape(1, C), b.reshape(1, C))
    return out.reshape(x.shape)


def layer_norm(x, weight, bias, eps=1e-6, data_format="channels_last"):
    """Forward pass of the PyTorch `LayerNorm` module (both data formats)."""
    if data_format == "channels_last":
        return layernorm_channels_last(x, weight, bias, eps)
    if data_format == "channels_first":
        return layernorm_channels_first(x, weight, bias, eps)
    raise NotImplementedError(data_format)


if __name__ == "__main__":
    key = jax.random.PRNGKey(0)
    k = jax.random.split(key, 9)

    # --- channels_first: LayerNorm(4, data_format='channels_first'), NCHW ---
    x_cf = jax.random.normal(k[0], (2, 4, 16, 16), dtype=jnp.float32)
    w_cf = 1.0 + 0.1 * jax.random.normal(k[1], (4,), dtype=jnp.float32)
    b_cf = 0.1 * jax.random.normal(k[2], (4,), dtype=jnp.float32)
    out_cf = jax.jit(functools.partial(layer_norm, data_format="channels_first"))(
        x_cf, w_cf, b_cf)
    out_cf = jax.block_until_ready(out_cf)

    # --- channels_last, small C (packed / MXU group-reduce path), NHWC C=8 ---
    x_cl = jax.random.normal(k[3], (2, 16, 16, 8), dtype=jnp.float32)
    w_cl = 1.0 + 0.1 * jax.random.normal(k[4], (8,), dtype=jnp.float32)
    b_cl = 0.1 * jax.random.normal(k[5], (8,), dtype=jnp.float32)
    out_cl = jax.jit(functools.partial(layer_norm, data_format="channels_last"))(
        x_cl, w_cl, b_cl)
    out_cl = jax.block_until_ready(out_cl)

    # --- channels_last, C that does not divide 128 (lane-reduce path) -------
    x_cg = jax.random.normal(k[6], (2, 4, 4, 96), dtype=jnp.float32)
    w_cg = 1.0 + 0.1 * jax.random.normal(k[7], (96,), dtype=jnp.float32)
    b_cg = 0.1 * jax.random.normal(k[8], (96,), dtype=jnp.float32)
    out_cg = jax.jit(functools.partial(layer_norm, data_format="channels_last"))(
        x_cg, w_cg, b_cg)
    out_cg = jax.block_until_ready(out_cg)

    # --- pure-JAX references (same math as the PyTorch module) --------------
    def ref_cf(x, w, b, eps=1e-6):
        u = jnp.mean(x, axis=1, keepdims=True)
        s = jnp.mean((x - u) ** 2, axis=1, keepdims=True)
        return (w[None, :, None, None] * ((x - u) / jnp.sqrt(s + eps))
                + b[None, :, None, None])

    def ref_cl(x, w, b, eps=1e-6):
        u = jnp.mean(x, axis=-1, keepdims=True)
        s = jnp.mean((x - u) ** 2, axis=-1, keepdims=True)
        return (x - u) / jnp.sqrt(s + eps) * w + b

    assert out_cf.shape == x_cf.shape and out_cf.dtype == x_cf.dtype
    assert out_cl.shape == x_cl.shape and out_cl.dtype == x_cl.dtype
    assert out_cg.shape == x_cg.shape and out_cg.dtype == x_cg.dtype
    assert jnp.allclose(out_cf, ref_cf(x_cf, w_cf, b_cf), atol=1e-4, rtol=1e-4)
    assert jnp.allclose(out_cl, ref_cl(x_cl, w_cl, b_cl), atol=1e-4, rtol=1e-4)
    assert jnp.allclose(out_cg, ref_cl(x_cg, w_cg, b_cg), atol=1e-4, rtol=1e-4)
    print("KERNEL_OK")
</pallas_src>

<mosaic_0001>
module attributes {stable_mosaic.version = 11 : i64} {
  func.func @_ln_channels_first_kernel(%arg0: i32, %arg1: i32, %arg2: memref<1x4x256xf32, #tpu.memory_space<vmem>>, %arg3: memref<4x1xf32, #tpu.memory_space<vmem>>, %arg4: memref<4x1xf32, #tpu.memory_space<vmem>>, %arg5: memref<1x4x256xf32, #tpu.memory_space<vmem>>) attributes {dimension_semantics = [#tpu.dimension_semantics<parallel>, #tpu.dimension_semantics<parallel>], iteration_bounds = array<i64: 2, 1>, scalar_prefetch = 0 : i64, scratch_operands = 0 : i64, tpu.core_type = #tpu.core_type<tc>, window_params = [{transform_indices = @transform_0, window_bounds = array<i64: 1, 4, 256>}, {pipeline_mode = #tpu.pipeline_mode<synchronous>, transform_indices = @transform_1, window_bounds = array<i64: 4, 1>}, {pipeline_mode = #tpu.pipeline_mode<synchronous>, transform_indices = @transform_2, window_bounds = array<i64: 4, 1>}, {transform_indices = @transform_3, window_bounds = array<i64: 1, 4, 256>}]} {
    %c0 = arith.constant 0 : index
    %c0_0 = arith.constant 0 : index
    %c0_1 = arith.constant 0 : index
    %0 = vector.load %arg2[%c0, %c0_0, %c0_1] : memref<1x4x256xf32, #tpu.memory_space<vmem>>, vector<1x4x256xf32>
    %cst = arith.constant dense<0.000000e+00> : vector<1x256xf32>
    %1 = vector.multi_reduction <add>, %0, %cst [1] : vector<1x4x256xf32> to vector<1x256xf32>
    %2 = vector.shape_cast %1 : vector<1x256xf32> to vector<1x1x256xf32>
    %cst_2 = arith.constant 4.000000e+00 : f32
    %3 = vector.broadcast %cst_2 : f32 to vector<1x1x256xf32>
    %4 = arith.divf %2, %3 : vector<1x1x256xf32>
    %5 = vector.broadcast %4 : vector<1x1x256xf32> to vector<1x4x256xf32>
    %6 = arith.subf %0, %5 : vector<1x4x256xf32>
    %7 = arith.mulf %6, %6 : vector<1x4x256xf32>
    %cst_3 = arith.constant dense<0.000000e+00> : vector<1x256xf32>
    %8 = vector.multi_reduction <add>, %7, %cst_3 [1] : vector<1x4x256xf32> to vector<1x256xf32>
    %9 = vector.shape_cast %8 : vector<1x256xf32> to vector<1x1x256xf32>
    %cst_4 = arith.constant 4.000000e+00 : f32
    %10 = vector.broadcast %cst_4 : f32 to vector<1x1x256xf32>
    %11 = arith.divf %9, %10 : vector<1x1x256xf32>
    %cst_5 = arith.constant 9.99999997E-7 : f32
    %12 = vector.broadcast %cst_5 : f32 to vector<1x1x256xf32>
    %13 = arith.addf %11, %12 : vector<1x1x256xf32>
    %14 = math.rsqrt %13 : vector<1x1x256xf32>
    %15 = vector.broadcast %14 : vector<1x1x256xf32> to vector<1x4x256xf32>
    %16 = arith.mulf %6, %15 : vector<1x4x256xf32>
    %c0_6 = arith.constant 0 : index
    %c0_7 = arith.constant 0 : index
    %17 = vector.load %arg3[%c0_6, %c0_7] : memref<4x1xf32, #tpu.memory_space<vmem>>, vector<4x1xf32>
    %18 = vector.shape_cast %17 : vector<4x1xf32> to vector<1x4x1xf32>
    %19 = vector.broadcast %18 : vector<1x4x1xf32> to vector<1x4x256xf32>
    %20 = arith.mulf %16, %19 : vector<1x4x256xf32>
    %c0_8 = arith.constant 0 : index
    %c0_9 = arith.constant 0 : index
    %21 = vector.load %arg4[%c0_8, %c0_9] : memref<4x1xf32, #tpu.memory_space<vmem>>, vector<4x1xf32>
    %22 = vector.shape_cast %21 : vector<4x1xf32> to vector<1x4x1xf32>
    %23 = vector.broadcast %22 : vector<1x4x1xf32> to vector<1x4x256xf32>
    %24 = arith.addf %20, %23 : vector<1x4x256xf32>
    %c0_10 = arith.constant 0 : index
    %c0_11 = arith.constant 0 : index
    %c0_12 = arith.constant 0 : index
    %25 = vector.load %arg5[%c0_10, %c0_11, %c0_12] : memref<1x4x256xf32, #tpu.memory_space<vmem>>, vector<1x4x256xf32>
    tpu.vector_store %arg5[%c0_10, %c0_11, %c0_12], %24 {strides = array<i32>} : memref<1x4x256xf32, #tpu.memory_space<vmem>>, vector<1x4x256xf32>,
    return
  }
  func.func @transform_0(%arg0: i32, %arg1: i32) -> (i32, i32, i32) {
    %c0_i32 = arith.constant 0 : i32
    %c0_i32_0 = arith.constant 0 : i32
    return %arg0, %c0_i32, %arg1 : i32, i32, i32
  }
  func.func @transform_1(%arg0: i32, %arg1: i32) -> (i32, i32) {
    %c0_i32 = arith.constant 0 : i32
    %c0_i32_0 = arith.constant 0 : i32
    %c0_i32_1 = arith.constant 0 : i32
    return %c0_i32, %c0_i32_0 : i32, i32
  }
  func.func @transform_2(%arg0: i32, %arg1: i32) -> (i32, i32) {
    %c0_i32 = arith.constant 0 : i32
    %c0_i32_0 = arith.constant 0 : i32
    %c0_i32_1 = arith.constant 0 : i32
    return %c0_i32, %c0_i32_0 : i32, i32
  }
  func.func @transform_3(%arg0: i32, %arg1: i32) -> (i32, i32, i32) {
    %c0_i32 = arith.constant 0 : i32
    %c0_i32_0 = arith.constant 0 : i32
    return %arg0, %c0_i32, %arg1 : i32, i32, i32
  }
}

</mosaic_0001>

<bundles_post_ra>
// kernel: layer_norm.1
= control target key start
LH: loop header
LB: loop body
LE: loop exit
PB: predicated region body
PF: predicated region fallthrough
CT: control target
= control target key end

     0   :  { %s473_s12 = smov 0   ;;  %s475_s13 = smov 0   ;;  %s523_s0 = inlined_call_operand.vmem [shape: f32[2,4,256], index: 0, kind: input, shape index: {}]   ;;  %s524_s1 = inlined_call_operand.vmem [shape: f32[4,1], index: 1, kind: input, shape index: {}]   ;;  %s525_s2 = inlined_call_operand.vmem [shape: f32[4,1], index: 2, kind: input, shape index: {}]   ;;  %s526_s3 = inlined_call_operand.vmem [shape: f32[2,4,256], index: 3, kind: output, shape index: {}]  }
   0x1   :  { %s477_s14 = smov 0  }
   0x2 LB: > { %s25_s15 = sadd.s32 1, %s445_s13  ;;  %p386_p0 = scmp.ge.s32.totalorder %s449_s14, 1  ;;  %s449_s14 = sphi %s477_s14, %s13_s14   ;;  %s445_s13 = sphi %s475_s13, %s528_s13   ;;  %s441_s12 = sphi %s473_s12, %s527_s12  }
   0x3   : > { %p27_p1 = scmp.ge.s32.totalorder %s25_s15, 2  ;;  %p158_p2 = scmp.lt.s32.totalorder %s449_s14, 3 }
   0x5   : > { %s530_s15 = smov (%p27_p1, %s25_s15), 0  ;;  %p159_p3 = pnand %p386_p0, %p158_p2 }
   0x6   : > { %p191_p4 = scmp.lt.s32.totalorder (!%p159_p3), %s441_s12, 1 }
   0x7   : > { %162 = sbr.rel (%p159_p3) target bundleno = 147 (0x93), region = 32 }
   0xc   : > { %v266_v0 = vld [vmem:[%s524_s1] sm:$0xf]  ;;  %v451_v1 = vmov 0   ;;  %s532_s12 = smov (!%p191_p4, %s441_s12), 1  ;;  %vm214_vm0 = vcmask 1043456   ;;  %v274_v45 = vlaneseq }
   0xd   : > { %421 = vset.pattern.permute.xlu0 %v451_v1  ;;  %v280_v2 = vld [vmem:[%s525_s2] sm:$0xf]  ;;  %s393_s20 = sshll.u32 %s532_s12, 3  ;;  %v452_v43 = vmov 839922192  }
   0xe   : > { %269 = vperm.xlu0 %421, %v266_v0   ;;  %s198_s23 = scalar_lea.vmem %s523_s0, %s393_s20  ;;  %v272_v44 = vunpack.c.l.s4 %v452_v43  ;;  %v275_v48 = vshrl.u32 %v274_v45, 7  ;;  %s208_s26 = scalar_lea.vmem %s526_s3, %s393_s20 }
   0xf   : > { %v210_v3 = vld [vmem:[%s198_s23] sm:$0xff] }
  0x10   : > { %v212_v4 = vcombine.high %v210_v3, %v210_v3  ;;  %v215_v5 = vsel %vm214_vm0, %v210_v3, 0.0  ;;  %v273_v47 = vunpack.c.0.s8 %v272_v44 }
  0x11   : > { %v216_v7 = vrot.slane %v215_v5, 4 }
  0x12   : > { %283 = vperm.xlu0 %421, %v280_v2   ;;  %v222_v6 = vsel %vm214_vm0, %v212_v4, 0.0  ;;  %v276_v50 = vsub.s32 %v273_v47, %v275_v48 }
  0x13   : > { %v223_v8 = vrot.slane %v222_v6, 4  ;;  %v217_v9 = vadd.f32 %v216_v7, %v215_v5 }
  0x15   : > { %v224_v10 = vadd.f32 %v223_v8, %v222_v6  ;;  %v218_v11 = vrot.slane %v217_v9, 2 }
  0x17   : > { %v225_v12 = vrot.slane %v224_v10, 2  ;;  %v219_v13 = vadd.f32 %v218_v11, %v217_v9 }
  0x19   : > { %v226_v14 = vadd.f32 %v225_v12, %v224_v10  ;;  %v220_v15 = vrot.slane %v219_v13, 1 }
  0x1b   : > { %v227_v16 = vrot.slane %v226_v14, 1  ;;  %v221_v17 = vadd.f32 %v220_v15, %v219_v13 }
  0x1d   : > { %v228_v18 = vadd.f32 %v227_v16, %v226_v14  ;;  %v230_v19 = vmul.f32 0.25, %v221_v17 }
  0x1f   : > { %v231_v20 = vmul.f32 0.25, %v228_v18 }
  0x21   : > { %v234_v21 = vcombine.low %v230_v19, %v231_v20 }
  0x23   : > { %v236_v22 = vsub.f32 %v210_v3, %v234_v21 }
  0x25   : > { %v237_v23 = vmul.f32 %v236_v22, %v236_v22 }
  0x27   : > { %v239_v24 = vcombine.high %v237_v23, %v237_v23  ;;  %v241_v25 = vsel %vm214_vm0, %v237_v23, 0.0 }
  0x28   : > { %v242_v27 = vrot.slane %v241_v25, 4 }
  0x29   : > { %v248_v26 = vsel %vm214_vm0, %v239_v24, 0.0 }
  0x2a   : > { %v249_v28 = vrot.slane %v248_v26, 4  ;;  %v243_v29 = vadd.f32 %v242_v27, %v241_v25 }
  0x2c   : > { %v250_v30 = vadd.f32 %v249_v28, %v248_v26  ;;  %v244_v31 = vrot.slane %v243_v29, 2 }
  0x2e   : > { %v251_v32 = vrot.slane %v250_v30, 2  ;;  %v245_v33 = vadd.f32 %v244_v31, %v243_v29 }
  0x30   : > { %v252_v34 = vadd.f32 %v251_v32, %v250_v30  ;;  %v246_v35 = vrot.slane %v245_v33, 1 }
  0x32   : > { %v253_v36 = vrot.slane %v252_v34, 1  ;;  %v247_v37 = vadd.f32 %v246_v35, %v245_v33 }
  0x34   : > { %v254_v38 = vadd.f32 %v253_v36, %v252_v34  ;;  %v255_v39 = vmul.f32 0.25, %v247_v37 }
  0x36   : > { %v256_v40 = vmul.f32 0.25, %v254_v38  ;;  %v257_v41 = vadd.f32 1e-06, %v255_v39 }
  0x38   : > { %v258_v42 = vadd.f32 1e-06, %v256_v40  ;;  %423 = vrsqrt.f32 %v257_v41 }
  0x3a   : > { %425 = vrsqrt.f32 %v258_v42 }
  0x45   : > { %v424_v46 = vpop.eup %423 }
  0x47   : > { %v426_v49 = vpop.eup %425 }
  0x48   : > { %v263_v51 = vcombine.low %v424_v46, %v426_v49 }
  0x4a   : > { %v265_v53 = vmul.f32 %v263_v51, %v236_v22 }
  0x89   : > { %v270_v52 = vpop.permute.xlu0 %269 }
  0x8a   : > { %v277_v54 = vrot.slane %v270_v52, %v276_v50 }
  0x8c   : > { %v279_v56 = vmul.f32 %v277_v54, %v265_v53 }
  0x8d   : > { %v284_v55 = vpop.permute.xlu0 %283 }
  0x8e   : > { %v291_v57 = vrot.slane %v284_v55, %v276_v50 }
  0x90   : > { %v293_v58 = vadd.f32 %v291_v57, %v279_v56 }
  0x92   : > { %294 = vst [vmem:[%s208_s26] sm:$0xff] %v293_v58 }
  0x93 PF: > { %s13_s14 = sadd.s32 1, %s449_s14   ;;  %s527_s12 = smov %s445_s13 }
  0x94   : > { %p10_p5 = scmp.ge.s32.totalorder %s13_s14, 4   ;;  %s528_s13 = smov %s530_s15 }
  0x96   :  { %12 = sbr.rel (!%p10_p5) target bundleno = 2 (0x2), region = 62 }

</bundles_post_ra>
